<compile_context>
chip_gen: v7x
topology: tpu7x:2x2x1
jax: 0.10.0
libtpu: 0.0.40
codegen_flags: <defaults>
</compile_context>

<pallas_src>
import functools

import jax
import jax.numpy as jnp
from jax.experimental import pallas as pl
from jax.experimental.pallas import tpu as pltpu


def _label_smooth_ce_kernel(x_ref, t_ref, o_ref, acc_ref, *,
                            epsilon, num_classes, batch, block_b, n_inner,
                            need_mask):
    """Streaming label-smoothed cross-entropy reduction.

    Per row b the contribution is (no one-hot / smoothed / log_probs
    materialization, using the identity):
        -(1-eps) * (z[b, t_b] - lse_b) - (eps/K) * (sum_c z[b, c] - K * lse_b)
    with z = x - max(x), lse = log(sum exp(z)).
    """
    p = pl.program_id(0)       # parallel (per-TensorCore) slice of the batch
    i = pl.program_id(1)       # streaming block inside this slice

    @pl.when(i == 0)
    def _():
        acc_ref[...] = jnp.zeros_like(acc_ref)

    x = x_ref[...].astype(jnp.float32)           # (TB, K)  cast in-register
    t = t_ref[...]                               # (TB, 1)  int32 labels

    m = jnp.max(x, axis=-1, keepdims=True)       # (TB, 1)
    z = x - m                                    # (TB, K)
    lse = jnp.log(jnp.sum(jnp.exp(z), axis=-1, keepdims=True))  # (TB, 1)

    col = jax.lax.broadcasted_iota(jnp.int32, x.shape, 1)        # (TB, K)
    z_t = jnp.sum(jnp.where(col == t, z, 0.0), axis=-1, keepdims=True)  # (TB,1)
    z_sum = jnp.sum(z, axis=-1, keepdims=True)                          # (TB,1)

    eps = jnp.float32(epsilon)
    k_f = jnp.float32(num_classes)
    per_row = (-(1.0 - eps) * (z_t - lse)
               - (eps / k_f) * (z_sum - k_f * lse))              # (TB, 1)

    if need_mask:
        # Only emitted when the padded grid does not tile the batch exactly.
        # per_row select alone is sufficient (true vsel: garbage/NaN in padded
        # rows never propagates) -- no full-tile mask on x is needed.
        blk = p * n_inner + i
        row = (jax.lax.broadcasted_iota(jnp.int32, (per_row.shape[0], 1), 0)
               + blk * block_b)
        per_row = jnp.where(row < batch, per_row, 0.0)

    # Per-row accumulation; the cross-sublane reduction happens once, in the
    # epilogue, instead of every grid step.
    acc_ref[...] += per_row

    @pl.when(i == pl.num_programs(1) - 1)
    def _():
        tot = jnp.sum(acc_ref[...], axis=0, keepdims=True)       # (1, 1)
        # Lane-dense, unmasked (8, 128) store of this core's partial sum.
        o_ref[...] = jnp.broadcast_to(tot, o_ref.shape)


def cross_entropy_label_smooth2(inputs, targets, *, num_classes, epsilon=0.1,
                                block_b=None, n_par=None):
    """Pallas TPU implementation of CrossEntropyLabelSmooth2.forward.

    inputs:  (B, K) logits (any float dtype; cast to f32 inside the kernel)
    targets: (B,)   int class indices
    returns: scalar float32 loss
    """
    B, K = inputs.shape
    assert K == num_classes
    t = targets.astype(jnp.int32).reshape(B, 1)

    itemsize = max(jnp.dtype(inputs.dtype).itemsize, 1)
    # Native sublane multiple: 8 for f32, 16 for bf16, 32 for int8/fp8.
    sub = max(8, 32 // itemsize)

    # Generation-aware VMEM budgets (v5e/v6e: 128 MiB; v7x: 64 MiB per TC).
    vmem_cap = 64 * 1024 * 1024
    try:
        vmem_cap = int(pltpu.get_tpu_info().vmem_capacity_bytes)
    except Exception:
        pass
    if vmem_cap >= 96 * 1024 * 1024:
        blocks_budget = 56 * 1024 * 1024      # total streamed buffers + scratch
        vmem_limit = 100 * 1024 * 1024
    else:
        blocks_budget = 24 * 1024 * 1024      # keep v7x well inside 64 MiB/TC
        vmem_limit = 48 * 1024 * 1024

    if block_b is None:
        # Byte-targeted tile sizing (no fixed row cap).  Account for the lane
        # padding of the (block_b, 1) targets (x2 buffers) and f32 accumulator.
        bytes_per_row = 2 * K * itemsize + 2 * 512 + 512
        tb = max(sub, int(blocks_budget // bytes_per_row))
        if B <= tb:
            block_b = B                       # full batch in one block
        else:
            block_b = max(sub, (tb // sub) * sub)
    assert block_b == B or block_b % sub == 0, \
        "block_b must equal B or be a multiple of the dtype sublane multiple"

    n_blocks = -(-B // block_b)               # ceil
    if n_par is None:
        n_par = 2 if n_blocks >= 2 else 1     # keep both v7x TensorCores busy
    n_par = max(1, min(int(n_par), n_blocks))
    n_inner = -(-n_blocks // n_par)

    need_mask = (n_par * n_inner * block_b != B)

    if n_par * n_inner > n_blocks:
        # Phantom grid positions: clamp the DMA to the last real block; the
        # row-index mask zeroes their contribution.
        def blk_idx(p, i):
            return jnp.minimum(p * n_inner + i, n_blocks - 1)
    else:
        def blk_idx(p, i):
            return p * n_inner + i

    kernel = functools.partial(
        _label_smooth_ce_kernel,
        epsilon=float(epsilon),
        num_classes=int(num_classes),
        batch=int(B),
        block_b=int(block_b),
        n_inner=int(n_inner),
        need_mask=bool(need_mask),
    )

    out = pl.pallas_call(
        kernel,
        out_shape=jax.ShapeDtypeStruct((n_par * 8, 128), jnp.float32),
        grid=(n_par, n_inner),
        in_specs=[
            pl.BlockSpec((block_b, K), lambda p, i: (blk_idx(p, i), 0)),
            pl.BlockSpec((block_b, 1), lambda p, i: (blk_idx(p, i), 0)),
        ],
        out_specs=pl.BlockSpec((8, 128), lambda p, i: (p, 0)),
        scratch_shapes=[pltpu.VMEM((block_b, 1), jnp.float32)],
        compiler_params=pltpu.CompilerParams(
            dimension_semantics=("parallel", "arbitrary"),
            vmem_limit_bytes=vmem_limit,
        ),
    )(inputs, t)

    partials = out.reshape(n_par, 8, 128)[:, 0, 0]       # one value per core
    return jnp.sum(partials) / jnp.float32(B)


def _reference(inputs, targets, num_classes, epsilon=0.1):
    log_probs = jax.nn.log_softmax(inputs.astype(jnp.float32), axis=1)
    onehot = jax.nn.one_hot(targets, num_classes, dtype=jnp.float32)
    smoothed = (1.0 - epsilon) * onehot + epsilon / num_classes
    return (-smoothed * log_probs).mean(0).sum()


if __name__ == "__main__":
    key = jax.random.PRNGKey(0)
    k1, k2, k3, k4, k5, k6 = jax.random.split(key, 6)

    # Case 1: small, batch fits one block (n_par=1, no masking).
    batch, num_classes = 8, 32
    inputs = jax.random.normal(k1, (batch, num_classes), dtype=jnp.float32)
    targets = jax.random.randint(k2, (batch,), 0, num_classes, dtype=jnp.int32)
    loss = cross_entropy_label_smooth2(inputs, targets,
                                       num_classes=num_classes, epsilon=0.1)
    loss = jax.block_until_ready(loss)
    ref = _reference(inputs, targets, num_classes, epsilon=0.1)
    assert jnp.allclose(loss, ref, rtol=1e-5, atol=1e-5), (loss, ref)

    # Case 2: ragged batch, streaming blocks, two-way parallel split with a
    # phantom (clamped) block and padded-row masking.
    batch2, num_classes2 = 20, 40
    inputs2 = jax.random.normal(k3, (batch2, num_classes2), dtype=jnp.float32)
    targets2 = jax.random.randint(k4, (batch2,), 0, num_classes2,
                                  dtype=jnp.int32)
    loss2 = cross_entropy_label_smooth2(inputs2, targets2,
                                        num_classes=num_classes2, epsilon=0.1,
                                        block_b=8, n_par=2)
    loss2 = jax.block_until_ready(loss2)
    ref2 = _reference(inputs2, targets2, num_classes2, epsilon=0.1)
    assert jnp.allclose(loss2, ref2, rtol=1e-5, atol=1e-5), (loss2, ref2)

    # Case 3: bf16 logits exercise the 16-row sublane rounding, the in-kernel
    # f32 cast, and the masked/parallel path.
    batch3, num_classes3 = 48, 128
    inputs3 = jax.random.normal(k5, (batch3, num_classes3),
                                dtype=jnp.float32).astype(jnp.bfloat16)
    targets3 = jax.random.randint(k6, (batch3,), 0, num_classes3,
                                  dtype=jnp.int32)
    loss3 = cross_entropy_label_smooth2(inputs3, targets3,
                                        num_classes=num_classes3, epsilon=0.1,
                                        block_b=16, n_par=2)
    loss3 = jax.block_until_ready(loss3)
    ref3 = _reference(inputs3, targets3, num_classes3, epsilon=0.1)
    assert jnp.allclose(loss3, ref3, rtol=1e-4, atol=1e-4), (loss3, ref3)

    print("KERNEL_OK")
</pallas_src>

<mosaic_0001>
module attributes {stable_mosaic.version = 11 : i64} {
  func.func @_label_smooth_ce_kernel(%arg0: i32, %arg1: i32, %arg2: memref<8x32xf32, #tpu.memory_space<vmem>>, %arg3: memref<8x1xi32, #tpu.memory_space<vmem>>, %arg4: memref<8x128xf32, #tpu.memory_space<vmem>>, %arg5: memref<8x1xf32, #tpu.memory_space<vmem>>) attributes {dimension_semantics = [#tpu.dimension_semantics<parallel>, #tpu.dimension_semantics<arbitrary>], iteration_bounds = array<i64: 1, 1>, scalar_prefetch = 0 : i64, scratch_operands = 1 : i64, tpu.core_type = #tpu.core_type<tc>, window_params = [{transform_indices = @transform_0, window_bounds = array<i64: 8, 32>}, {transform_indices = @transform_1, window_bounds = array<i64: 8, 1>}, {transform_indices = @transform_2, window_bounds = array<i64: 8, 128>}]} {
    %c0_i32 = arith.constant 0 : i32
    %0 = arith.cmpi eq, %arg1, %c0_i32 : i32
    %1 = arith.extui %0 : i1 to i32
    %c0_i32_0 = arith.constant 0 : i32
    %2 = arith.cmpi ne, %1, %c0_i32_0 : i32
    scf.if %2 {
      %cst_20 = arith.constant 0.000000e+00 : f32
      %40 = vector.broadcast %cst_20 : f32 to vector<8x1xf32>
      %c0_21 = arith.constant 0 : index
      %c0_22 = arith.constant 0 : index
      %41 = vector.load %arg5[%c0_21, %c0_22] : memref<8x1xf32, #tpu.memory_space<vmem>>, vector<8x1xf32>
      tpu.vector_store %arg5[%c0_21, %c0_22], %40 {strides = array<i32>} : memref<8x1xf32, #tpu.memory_space<vmem>>, vector<8x1xf32>,
    } else {
    }
    %c0 = arith.constant 0 : index
    %c0_1 = arith.constant 0 : index
    %3 = vector.load %arg2[%c0, %c0_1] : memref<8x32xf32, #tpu.memory_space<vmem>>, vector<8x32xf32>
    %c0_2 = arith.constant 0 : index
    %c0_3 = arith.constant 0 : index
    %4 = vector.load %arg3[%c0_2, %c0_3] : memref<8x1xi32, #tpu.memory_space<vmem>>, vector<8x1xi32>
    %cst = arith.constant dense<0xFF800000> : vector<8xf32>
    %5 = vector.multi_reduction <maximumf>, %3, %cst [1] : vector<8x32xf32> to vector<8xf32>
    %6 = vector.shape_cast %5 : vector<8xf32> to vector<8x1xf32>
    %7 = vector.broadcast %6 : vector<8x1xf32> to vector<8x32xf32>
    %8 = arith.subf %3, %7 : vector<8x32xf32>
    %9 = math.exp %8 : vector<8x32xf32>
    %cst_4 = arith.constant dense<0.000000e+00> : vector<8xf32>
    %10 = vector.multi_reduction <add>, %9, %cst_4 [1] : vector<8x32xf32> to vector<8xf32>
    %11 = vector.shape_cast %10 : vector<8xf32> to vector<8x1xf32>
    %12 = math.log %11 : vector<8x1xf32>
    %13 = tpu.iota {dimensions = array<i32: 1>} : vector<8x32xi32>
    %14 = vector.broadcast %4 : vector<8x1xi32> to vector<8x32xi32>
    %15 = arith.cmpi eq, %13, %14 : vector<8x32xi32>
    %cst_5 = arith.constant 0.000000e+00 : f32
    %16 = vector.broadcast %cst_5 : f32 to vector<8x32xf32>
    %17 = arith.select %15, %8, %16 : vector<8x32xi1>, vector<8x32xf32>
    %cst_6 = arith.constant dense<0.000000e+00> : vector<8xf32>
    %18 = vector.multi_reduction <add>, %17, %cst_6 [1] : vector<8x32xf32> to vector<8xf32>
    %19 = vector.shape_cast %18 : vector<8xf32> to vector<8x1xf32>
    %cst_7 = arith.constant dense<0.000000e+00> : vector<8xf32>
    %20 = vector.multi_reduction <add>, %8, %cst_7 [1] : vector<8x32xf32> to vector<8xf32>
    %21 = vector.shape_cast %20 : vector<8xf32> to vector<8x1xf32>
    %cst_8 = arith.constant 1.000000e+00 : f32
    %cst_9 = arith.constant 1.000000e-01 : f32
    %22 = arith.subf %cst_8, %cst_9 : f32
    %cst_10 = arith.constant 0.000000e+00 : f32
    %23 = arith.subf %cst_10, %22 : f32
    %24 = arith.subf %19, %12 : vector<8x1xf32>
    %25 = vector.broadcast %23 : f32 to vector<8x1xf32>
    %26 = arith.mulf %25, %24 : vector<8x1xf32>
    %cst_11 = arith.constant 1.000000e-01 : f32
    %cst_12 = arith.constant 3.200000e+01 : f32
    %27 = arith.divf %cst_11, %cst_12 : f32
    %cst_13 = arith.constant 3.200000e+01 : f32
    %28 = vector.broadcast %cst_13 : f32 to vector<8x1xf32>
    %29 = arith.mulf %28, %12 : vector<8x1xf32>
    %30 = arith.subf %21, %29 : vector<8x1xf32>
    %31 = vector.broadcast %27 : f32 to vector<8x1xf32>
    %32 = arith.mulf %31, %30 : vector<8x1xf32>
    %33 = arith.subf %26, %32 : vector<8x1xf32>
    %c0_14 = arith.constant 0 : index
    %c0_15 = arith.constant 0 : index
    %34 = vector.load %arg5[%c0_14, %c0_15] : memref<8x1xf32, #tpu.memory_space<vmem>>, vector<8x1xf32>
    %35 = arith.addf %34, %33 : vector<8x1xf32>
    %c0_16 = arith.constant 0 : index
    %c0_17 = arith.constant 0 : index
    %36 = vector.load %arg5[%c0_16, %c0_17] : memref<8x1xf32, #tpu.memory_space<vmem>>, vector<8x1xf32>
    tpu.vector_store %arg5[%c0_16, %c0_17], %35 {strides = array<i32>} : memref<8x1xf32, #tpu.memory_space<vmem>>, vector<8x1xf32>,
    %c0_i32_18 = arith.constant 0 : i32
    %37 = arith.cmpi eq, %arg1, %c0_i32_18 : i32
    %38 = arith.extui %37 : i1 to i32
    %c0_i32_19 = arith.constant 0 : i32
    %39 = arith.cmpi ne, %38, %c0_i32_19 : i32
    scf.if %39 {
      %c0_20 = arith.constant 0 : index
      %c0_21 = arith.constant 0 : index
      %40 = vector.load %arg5[%c0_20, %c0_21] : memref<8x1xf32, #tpu.memory_space<vmem>>, vector<8x1xf32>
      %cst_22 = arith.constant dense<0.000000e+00> : vector<1xf32>
      %41 = vector.multi_reduction <add>, %40, %cst_22 [0] : vector<8x1xf32> to vector<1xf32>
      %42 = vector.shape_cast %41 : vector<1xf32> to vector<1x1xf32>
      %43 = vector.shape_cast %42 : vector<1x1xf32> to vector<1x1xf32>
      %44 = vector.broadcast %43 : vector<1x1xf32> to vector<8x128xf32>
      %c0_23 = arith.constant 0 : index
      %c0_24 = arith.constant 0 : index
      %45 = vector.load %arg4[%c0_23, %c0_24] : memref<8x128xf32, #tpu.memory_space<vmem>>, vector<8x128xf32>
      tpu.vector_store %arg4[%c0_23, %c0_24], %44 {strides = array<i32>} : memref<8x128xf32, #tpu.memory_space<vmem>>, vector<8x128xf32>,
    } else {
    }
    return
  }
  func.func @transform_0(%arg0: i32, %arg1: i32) -> (i32, i32) {
    %c1_i32 = arith.constant 1 : i32
    %0 = arith.muli %arg0, %c1_i32 : i32
    %1 = arith.addi %0, %arg1 : i32
    %c0_i32 = arith.constant 0 : i32
    %c0_i32_0 = arith.constant 0 : i32
    return %1, %c0_i32 : i32, i32
  }
  func.func @transform_1(%arg0: i32, %arg1: i32) -> (i32, i32) {
    %c1_i32 = arith.constant 1 : i32
    %0 = arith.muli %arg0, %c1_i32 : i32
    %1 = arith.addi %0, %arg1 : i32
    %c0_i32 = arith.constant 0 : i32
    %c0_i32_0 = arith.constant 0 : i32
    return %1, %c0_i32 : i32, i32
  }
  func.func @transform_2(%arg0: i32, %arg1: i32) -> (i32, i32) {
    %c0_i32 = arith.constant 0 : i32
    %c0_i32_0 = arith.constant 0 : i32
    return %arg0, %c0_i32 : i32, i32
  }
}

</mosaic_0001>

<bundles_post_ra>
// kernel: tpu_custom_call.1
= control target key start
LH: loop header
LB: loop body
LE: loop exit
PB: predicated region body
PF: predicated region fallthrough
CT: control target
= control target key end

     0   :  { %vm54_vm0 = vcmask 261120   ;;  %s208_s0 = inlined_call_operand.vmem [shape: f32[8,32], index: 0, kind: input, shape index: {}]   ;;  %s209_s1 = inlined_call_operand.vmem [shape: s32[8,1], index: 1, kind: input, shape index: {}]   ;;  %s210_s2 = inlined_call_operand.hbm [shape: f32[8,128], index: 2, kind: output, shape index: {}]  }
   0x1   :  { %v52_v0 = vld [vmem:[%s208_s0] sm:$0xff] }
   0x2   :  { %7 = vsyncpa [#allocation4], 0  ;;  %v55_v1 = vsel %vm54_vm0, %v52_v0, -inf  ;;  %v165_v2 = vmov 0   ;;  %v53_v3 = vld [vmem:[%s209_s1] sm:$0xff]  ;;  %v66_v7 = vlaneseq  ;;  %vm50_vm2 = vcmask 7168  }
   0x3   :  { %135 = vset.pattern.permute.xlu0 %v165_v2  ;;  %136 = vset.pattern.permute.xlu1 %v165_v2  ;;  %v166_v15 = vmov 0.0   ;;  %s167_s0 = smov [#allocation3]  }
   0x4   :  { %56 = vmax.xlane.f32.xlu0 %v55_v1  ;;  %v67_v8 = vand.u32 127, %v66_v7  ;;  %51 = vst.msk [vmem:[#allocation2] sm:$0xff] %vm50_vm2, %v166_v15  ;;  %s112_s1 = sshll.u32 %s167_s0, 4  ;;  %s113_s1 = int_to_ptr.vmem [resolvable:$true] %s112_s1 }
   0x5   :  { %s141_s13 = scalar_lea.vmem %s113_s1, 128  ;;  %p146_p1 = scmp.lt.s32.totalorder %s113_s1, %s113_s1 }
   0x6   :  { %p142_p0 = scmp.ne.s32.totalorder %s113_s1, %s141_s13  ;;  %p147_p2 = scmp.lt.s32.totalorder %s141_s13, %s141_s13 }
   0x8   :  { %p148_p3 = por %p147_p2, %p146_p1 }
   0xa   :  { %p149_p4 = pnand %p148_p3, %p142_p0 }
   0xb   :  { %v85_v26 = vld [vmem:[#allocation2] sm:$0xff] }
  0x1a   :  { %69 = vperm.xlu0 %135, %v53_v3  }
  0x91   :  { %v57_v4 = vpop.xlane.xlu0 %56 }
  0x92   :  { %v58_v5 = vsub.f32 %v52_v0, %v57_v4 }
  0x94   :  { %v59_v6 = vmul.f32 1.442695, %v58_v5  ;;  %v76_v14 = vsel %vm54_vm0, %v58_v5, 0.0 }
  0x96   :  { %137 = vpow2.f32 %v59_v6 }
  0x99   :  { %v70_v9 = vpop.permute.xlu0 %69 }
  0x9a   :  { %vm71_vm1 = vcmp.eq.s32.totalorder %v67_v8, %v70_v9 }
  0x9b   :  { %v72_v12 = vsel %vm71_vm1, %v58_v5, 0.0 }
  0x9c   :  { %v73_v13 = vsel %vm54_vm0, %v72_v12, 0.0 }
  0xa0   :  { %v138_v10 = vpop.eup %137 }
  0xa1   :  { %v61_v11 = vsel %vm54_vm0, %v138_v10, 0.0 }
  0xa2   :  { %62 = vadd.xlane.f32.xlu1 %v61_v11 }
  0xa6   :  { %74 = vadd.xlane.f32.xlu1 %v73_v13 }
  0xaa   :  { %77 = vadd.xlane.f32.xlu1 %v76_v14 }
 0x12f   :  { %v63_v16 = vpop.xlane.xlu1 %62 }
 0x130   :  { %139 = vlog2.f32 %v63_v16 }
 0x133   :  { %v75_v17 = vpop.xlane.xlu1 %74 }
 0x137   :  { %v78_v22 = vpop.xlane.xlu1 %77 }
 0x13a   :  { %v140_v18 = vpop.eup %139 }
 0x13b   :  { %v65_v19 = vmul.f32 0.6931472, %v140_v18 }
 0x13d   :  { %v79_v20 = vsub.f32 %v75_v17, %v65_v19  ;;  %v81_v21 = vmul.f32 32.0, %v65_v19 }
 0x13f   :  { %v82_v23 = vsub.f32 %v78_v22, %v81_v21  ;;  %v80_v24 = vmul.f32 -0.9, %v79_v20 }
 0x141   :  { %v83_v25 = vmul.f32 0.003125, %v82_v23 }
 0x143   :  { %v84_v27 = vsub.f32 %v80_v24, %v83_v25 }
 0x145   :  { %v86_v28 = vadd.f32 %v85_v26, %v84_v27 }
 0x147   :  { %88 = vst.msk [vmem:[#allocation2] sm:$0xff] %vm50_vm2, %v86_v28 }
 0x14e   :  { %v92_v29 = vld [vmem:[#allocation2] sm:$0xff] }
 0x14f   :  { %v93_v30 = vsel %vm50_vm2, %v92_v29, 0.0 }
 0x150   :  { %v94_v31 = vrot.slane %v93_v30, 4 }
 0x152   :  { %v95_v32 = vadd.f32 %v94_v31, %v93_v30 }
 0x154   :  { %v96_v33 = vrot.slane %v95_v32, 2 }
 0x156   :  { %v97_v34 = vadd.f32 %v96_v33, %v95_v32 }
 0x158   :  { %v98_v35 = vrot.slane %v97_v34, 1 }
 0x15a   :  { %v99_v36 = vadd.f32 %v98_v35, %v97_v34 }
 0x15c   :  { %102 = vperm.xlu1 %136, %v99_v36  }
 0x1db   :  { %v103_v37 = vpop.permute.xlu1 %102 }
 0x1dc   :  { %105 = vst [vmem:[#allocation3] sm:$0xff] %v103_v37 }
 0x1dd   :  { %152 = shalt.err (!%p149_p4)
}
 0x1de   :  { %s153_s16 = scalar_lea.hbm %s210_s2, 128 }
 0x1df   :  { %p154_p5 = scmp.ne.s32.totalorder %s210_s2, %s153_s16  ;;  %p157_p6 = scmp.lt.u32.totalorder %s153_s16, %s210_s2 }
 0x1e1   :  { %p159_p7 = pnand %p157_p6, %p154_p5 }
 0x1e3   :  { %162 = shalt.err (!%p159_p7)
}
 0x1e4   :  { %115 = dma.vmem_to_hbm [thread:$0]  %s113_s1, 128, %s210_s2, [#allocation4]  }
 0x1e5   :  { %163 = dma.done.wait [#allocation4], 128  }
 0x1e6   :  { %164 = vsyncadd [#allocation4], 4294967168 }
 0x1e7   :  { %119 = vsyncpa [#allocation4], 1 }

</bundles_post_ra>
